<compile_context>
chip_gen: v5e
topology: v5e:2x2
jax: 0.10.0
libtpu: 0.0.40
codegen_flags: <defaults>
</compile_context>

<pallas_src>
import functools

import jax
import jax.numpy as jnp
from jax import lax
from jax.experimental import pallas as pl
from jax.experimental.pallas import tpu as pltpu


def layerdrop_kernel(kept_ids_ref, num_kept_ref, x_ref, w_ref, b_ref, o_ref):
    """One grid step == one row block pushed through all kept layers.

    kept_ids_ref : SMEM int32[L]   kept-layer indices first (in order), then
                                   the dropped ones (never read past num_kept)
    num_kept_ref : SMEM int32[1]   number of kept layers
    x_ref : VMEM (tm, H) f32       input rows for this block
    w_ref : VMEM (L, H, H) bf16    all weights, fully resident (pre-transposed)
    b_ref : VMEM (L, H)  f32       all biases, fully resident
    o_ref : VMEM (tm, H) f32       output rows; also the running accumulator
    """
    o_ref[...] = x_ref[...]

    def body(l, carry):
        kid = kept_ids_ref[l]                                # SMEM scalar read
        y = jnp.dot(
            o_ref[...].astype(w_ref.dtype),                  # bf16 LHS for MXU
            w_ref[kid],                                      # (H, H) bf16
            preferred_element_type=jnp.float32,              # f32 accumulation
        )
        o_ref[...] = y + b_ref[pl.ds(kid, 1), :]             # (1, H) bias bcast
        return carry

    lax.fori_loop(0, num_kept_ref[0], body, 0)


@functools.partial(jax.jit, static_argnames=("tm",))
def layerdrop_forward(keep, feats_2d, weights_bf16, biases, *, tm=256):
    """Apply all non-dropped Linear layers sequentially via one pallas_call.

    keep         : int32[L]       1 if layer is applied
    feats_2d     : f32[M, H]
    weights_bf16 : bf16[L, H, H]  (pre-transposed: y = x @ W[l] + b[l])
    biases       : f32[L, H]
    """
    L, H, _ = weights_bf16.shape
    M = feats_2d.shape[0]
    assert M % tm == 0 and H % 128 == 0 and tm % 8 == 0

    # Resident-weight budget: keep well inside v7x's 64 MiB VMEM.
    resident_w_bytes = L * H * H * weights_bf16.dtype.itemsize
    assert resident_w_bytes <= 40 * 1024 * 1024, "weights too large for VMEM residency"
    # TODO(synk): for weight stacks > ~40 MiB, fall back to streaming W[kid]
    # from HBM (memory_space=pl.ANY + manual double-buffered make_async_copy)
    # instead of full residency.

    # VMEM budget derived from the actual buffers (+50% headroom), not a
    # hardcoded constant.
    vmem_needed = (
        2 * tm * H * 4            # x, double-buffered
        + 2 * tm * H * 4          # out, double-buffered
        + 2 * resident_w_bytes    # resident weights (budget 2 buffers)
        + 2 * L * H * 4           # resident biases
    )
    vmem_limit = min(max(int(vmem_needed * 1.5), 4 * 1024 * 1024),
                     48 * 1024 * 1024)

    # Compact the keep mask: kept layer indices first (in original order),
    # dropped indices in the tail.  The in-kernel loop runs only over the
    # first num_kept slots, so no padding scheme is needed.
    idx = jnp.arange(L, dtype=jnp.int32)
    keep = keep.astype(jnp.int32)
    num_kept = jnp.sum(keep).astype(jnp.int32).reshape((1,))
    kept_ids = jnp.argsort(jnp.where(keep != 0, idx, idx + L)).astype(jnp.int32)

    grid_spec = pltpu.PrefetchScalarGridSpec(
        num_scalar_prefetch=2,
        grid=(M // tm,),
        in_specs=[
            # feats: one block per row-block.
            pl.BlockSpec((tm, H), lambda m, kid, nk: (m, 0)),
            # weights: single resident (L, H, H) block, fetched once.
            pl.BlockSpec((L, H, H), lambda m, kid, nk: (0, 0, 0)),
            # biases: single resident (L, H) block.
            pl.BlockSpec((L, H), lambda m, kid, nk: (0, 0)),
        ],
        out_specs=pl.BlockSpec((tm, H), lambda m, kid, nk: (m, 0)),
    )

    # TODO(synk): if the caller never reuses feats_2d, alias it to the output
    # (input_output_aliases) to drop the extra M*H*4 output HBM allocation.
    return pl.pallas_call(
        layerdrop_kernel,
        out_shape=jax.ShapeDtypeStruct((M, H), jnp.float32),
        grid_spec=grid_spec,
        compiler_params=pltpu.CompilerParams(
            dimension_semantics=("parallel",),
            vmem_limit_bytes=vmem_limit,
        ),
    )(kept_ids, num_kept, feats_2d, weights_bf16, biases)


def layerdrop_reference(keep, feats_2d, weights_bf16, biases):
    """Pure-JAX reference with identical numerics (bf16 matmul, f32 accum)."""
    x = feats_2d.astype(jnp.float32)
    for l in range(weights_bf16.shape[0]):
        y = jnp.dot(x.astype(jnp.bfloat16), weights_bf16[l],
                    preferred_element_type=jnp.float32) + biases[l]
        x = jnp.where(keep[l] != 0, y, x)
    return x


if __name__ == "__main__":
    # Small stack of Linear(H, H) layers.  M = B*S = 512 so tm=256 gives two
    # 256-row blocks: >=2 blocks for the v7x 2-TC megacore, >=256 LHS rows per
    # jnp.dot for the 256x256 MXU on v6e/v7x.
    B, S, H = 2, 256, 128    # batch, seq, hidden  -> M = 512
    L = 6                    # len(module_list)
    LAYERS_TO_DROP = 2
    TM = 256                 # row-block size (multiple of 128)

    key = jax.random.PRNGKey(0)
    k_x, k_w, k_b, k_drop = jax.random.split(key, 4)

    # Deterministic parameter init (synthetic; not a checkpoint load).
    feats = jax.random.normal(k_x, (B, S, H), dtype=jnp.float32)
    weights = jax.random.normal(k_w, (L, H, H), dtype=jnp.float32) * 0.02
    biases = jax.random.normal(k_b, (L, H), dtype=jnp.float32) * 0.02

    # torch.randint(0, L, (layers_to_drop,)) equivalent: uniform ints with
    # replacement; layer l is applied iff l was not sampled.
    dropped = jax.random.randint(k_drop, (LAYERS_TO_DROP,), 0, L)
    keep = (~jnp.isin(jnp.arange(L), dropped)).astype(jnp.int32)

    # MXU-native bf16 weight storage (halves weight HBM/VMEM footprint).
    # TODO(synk): on v7x an fp8 (e4m3) weight path would halve this again, but
    # it changes numerics vs the reference and is not portable to v5e/v6e.
    weights_bf16 = weights.astype(jnp.bfloat16)

    # TODO(synk): the `mask is not None` branch (layer(feats, mask)) depends on
    # the concrete layer type and is not instantiated here.

    feats_2d = feats.reshape(B * S, H)
    out = layerdrop_forward(keep, feats_2d, weights_bf16, biases, tm=TM)
    out = jax.block_until_ready(out)

    ref = layerdrop_reference(keep, feats_2d, weights_bf16, biases)
    assert jnp.allclose(out, ref, atol=1e-2, rtol=1e-2), "mismatch vs reference"

    out = out.reshape(B, S, H)  # back to [B, S, H]
    print("KERNEL_OK")
</pallas_src>

<mosaic_0001>
module attributes {stable_mosaic.version = 11 : i64} {
  func.func @layerdrop_kernel(%arg0: i32, %arg1: memref<6xi32, #tpu.memory_space<smem>>, %arg2: memref<1xi32, #tpu.memory_space<smem>>, %arg3: memref<256x128xf32, #tpu.memory_space<vmem>>, %arg4: memref<6x128x128xbf16, #tpu.memory_space<vmem>>, %arg5: memref<6x128xf32, #tpu.memory_space<vmem>>, %arg6: memref<256x128xf32, #tpu.memory_space<vmem>>) attributes {dimension_semantics = [#tpu.dimension_semantics<parallel>], iteration_bounds = array<i64: 2>, scalar_prefetch = 2 : i64, scratch_operands = 0 : i64, tpu.core_type = #tpu.core_type<tc>, window_params = [{transform_indices = @transform_0, window_bounds = array<i64: 256, 128>}, {pipeline_mode = #tpu.pipeline_mode<synchronous>, transform_indices = @transform_1, window_bounds = array<i64: 6, 128, 128>}, {pipeline_mode = #tpu.pipeline_mode<synchronous>, transform_indices = @transform_2, window_bounds = array<i64: 6, 128>}, {transform_indices = @transform_3, window_bounds = array<i64: 256, 128>}]} {
    %c0 = arith.constant 0 : index
    %c0_0 = arith.constant 0 : index
    %0 = vector.load %arg3[%c0, %c0_0] : memref<256x128xf32, #tpu.memory_space<vmem>>, vector<256x128xf32>
    %c0_1 = arith.constant 0 : index
    %c0_2 = arith.constant 0 : index
    %1 = vector.load %arg6[%c0_1, %c0_2] : memref<256x128xf32, #tpu.memory_space<vmem>>, vector<256x128xf32>
    tpu.vector_store %arg6[%c0_1, %c0_2], %0 {strides = array<i32>} : memref<256x128xf32, #tpu.memory_space<vmem>>, vector<256x128xf32>,
    %c0_3 = arith.constant 0 : index
    %2 = memref.load %arg2[%c0_3] : memref<1xi32, #tpu.memory_space<smem>>
    %c0_i32 = arith.constant 0 : i32
    %c0_i32_4 = arith.constant 0 : i32
    %3 = arith.subi %2, %c0_i32_4 : i32
    %4 = arith.addi %c0_i32_4, %3 : i32
    %c1_i32 = arith.constant 1 : i32
    scf.for %arg7 = %c0_i32_4 to %4 step %c1_i32  : i32 {
      %5 = arith.index_cast %arg7 : i32 to index
      %6 = memref.load %arg1[%5] : memref<6xi32, #tpu.memory_space<smem>>
      %c0_5 = arith.constant 0 : index
      %c0_6 = arith.constant 0 : index
      %7 = vector.load %arg6[%c0_5, %c0_6] : memref<256x128xf32, #tpu.memory_space<vmem>>, vector<256x128xf32>
      %8 = arith.truncf %7 : vector<256x128xf32> to vector<256x128xbf16>
      %9 = arith.index_cast %6 : i32 to index
      %c0_7 = arith.constant 0 : index
      %c0_8 = arith.constant 0 : index
      %10 = vector.load %arg4[%9, %c0_7, %c0_8] : memref<6x128x128xbf16, #tpu.memory_space<vmem>>, vector<1x128x128xbf16>
      %11 = vector.shape_cast %10 : vector<1x128x128xbf16> to vector<128x128xbf16>
      %cst = arith.constant dense<0.000000e+00> : vector<256x128xf32>
      %12 = tpu.matmul %8, %11, %cst {dimension_numbers = #tpu.dot_dimension_numbers<[1], [0], [0], [1], [0, 0, 1, 1], [], []>} : vector<256x128xbf16>, vector<128x128xbf16>, vector<256x128xf32> -> vector<256x128xf32>
      %13 = arith.index_cast %6 : i32 to index
      %c0_9 = arith.constant 0 : index
      %14 = vector.load %arg5[%13, %c0_9] : memref<6x128xf32, #tpu.memory_space<vmem>>, vector<1x128xf32>
      %15 = vector.broadcast %14 : vector<1x128xf32> to vector<256x128xf32>
      %16 = arith.addf %12, %15 : vector<256x128xf32>
      %c0_10 = arith.constant 0 : index
      %c0_11 = arith.constant 0 : index
      %17 = vector.load %arg6[%c0_10, %c0_11] : memref<256x128xf32, #tpu.memory_space<vmem>>, vector<256x128xf32>
      tpu.vector_store %arg6[%c0_10, %c0_11], %16 {strides = array<i32>} : memref<256x128xf32, #tpu.memory_space<vmem>>, vector<256x128xf32>,
    }
    return
  }
  func.func @transform_0(%arg0: i32, %arg1: memref<6xi32, #tpu.memory_space<smem>>, %arg2: memref<1xi32, #tpu.memory_space<smem>>) -> (i32, i32) {
    %c0_i32 = arith.constant 0 : i32
    %c0_i32_0 = arith.constant 0 : i32
    return %arg0, %c0_i32 : i32, i32
  }
  func.func @transform_1(%arg0: i32, %arg1: memref<6xi32, #tpu.memory_space<smem>>, %arg2: memref<1xi32, #tpu.memory_space<smem>>) -> (i32, i32, i32) {
    %c0_i32 = arith.constant 0 : i32
    %c0_i32_0 = arith.constant 0 : i32
    %c0_i32_1 = arith.constant 0 : i32
    %c0_i32_2 = arith.constant 0 : i32
    return %c0_i32, %c0_i32_0, %c0_i32_1 : i32, i32, i32
  }
  func.func @transform_2(%arg0: i32, %arg1: memref<6xi32, #tpu.memory_space<smem>>, %arg2: memref<1xi32, #tpu.memory_space<smem>>) -> (i32, i32) {
    %c0_i32 = arith.constant 0 : i32
    %c0_i32_0 = arith.constant 0 : i32
    %c0_i32_1 = arith.constant 0 : i32
    return %c0_i32, %c0_i32_0 : i32, i32
  }
  func.func @transform_3(%arg0: i32, %arg1: memref<6xi32, #tpu.memory_space<smem>>, %arg2: memref<1xi32, #tpu.memory_space<smem>>) -> (i32, i32) {
    %c0_i32 = arith.constant 0 : i32
    %c0_i32_0 = arith.constant 0 : i32
    return %arg0, %c0_i32 : i32, i32
  }
}

</mosaic_0001>

<bundles_post_ra>
// kernel: layerdrop_forward.1
= control target key start
LH: loop header
LB: loop body
LE: loop exit
PB: predicated region body
PF: predicated region fallthrough
CT: control target
= control target key end

     0   :  { %s952_s23 = smov [#allocation3]   ;;  %s1338_s0 = inlined_call_operand.vmem [shape: s32[6], index: 0, kind: input, shape index: {}]   ;;  %s1339_s1 = inlined_call_operand.<no memory space> [shape: s32[1], index: 1, kind: input, shape index: {}]   ;;  %s1340_s2 = inlined_call_operand.hbm [shape: f32[512,128], index: 2, kind: input, shape index: {}]   ;;  %s1341_s3 = inlined_call_operand.hbm [shape: bf16[6,128,128], index: 3, kind: input, shape index: {}]   ;;  %s1342_s4 = inlined_call_operand.vmem [shape: f32[6,128], index: 4, kind: input, shape index: {}]   ;;  %s1343_s5 = inlined_call_operand.hbm [shape: f32[512,128], index: 5, kind: output, shape index: {}]  }
   0x1   :  { %s11_s20 = sshll.u32 %s1338_s0, 4  ;;  %15 = sst [smem:[#allocation4]] %s1339_s1  ;;  %s12_s20 = int_to_ptr.vmem [resolvable:$true] %s11_s20 }
   0x2   :  { %14 = dma.vmem_to_smem %s12_s20, 16, %s952_s23, [#allocation2] }
   0x3   :  { %918 = dma.done.wait [#allocation2], 16 }
   0x4   :  { %919 = vsyncadd [#allocation2], 4294967280 }
   0x5   :  { %18 = sfence }
   0x6   :  { %19 = vsyncpa [#allocation6], 0 }
   0x7   :  { %21 = vsyncpa [#allocation6 + $0x1], 0 }
   0x8   :  { %22 = vsyncpa [#allocation9], 0 }
   0x9   :  { %23 = vsyncpa [#allocation7], 0 }
   0xa   :  { %25 = vsyncpa [#allocation7 + $0x1], 0  ;;  %s996_s24 = smov 0   ;;  %s998_s25 = smov 0  }
   0xb   :  { %s1000_s0 = smov 0   ;;  %s1002_s26 = smov 0  }
   0xc LB: > { %s1017_s1 = sadd.s32 4294967295, %s946_s26   ;;  %s639_s27 = sadd.s32 4294967294, %s946_s26   ;;  %s946_s26 = sphi %s1002_s26, %s1353_s26   ;;  %s942_s0 = sphi %s1000_s0, %s1352_s0   ;;  %s938_s25 = sphi %s998_s25, %s1351_s25   ;;  %s934_s24 = sphi %s996_s24, %s1350_s24  }
   0xd   : > { %p51_p0 = scmp.ne.s32.totalorder %s938_s25, %s934_s24  ;;  %p52_p1 = scmp.eq.s32.totalorder %s1017_s1, 0 }
   0xe   : > { %p117_p2 = scmp.eq.s32.totalorder %s1017_s1, 1  ;;  %p123_p3 = scmp.eq.s32.totalorder %s639_s27, 1 }
   0xf   : > { %p1026_p4 = por %p52_p1, %p51_p0  ;;  %p640_p5 = scmp.ge.s32.totalorder %s946_s26, 1 }
  0x10   : > { %p1031_p6 = por %p123_p3, %p51_p0  ;;  %p130_p7 = scmp.lt.s32.totalorder %s946_s26, 3 }
  0x11   : > { %s141_s7 = sshll.u32 %s1341_s3, 4  ;;  %s953_s9 = smov [#allocation8]   ;;  %s142_s7 = int_to_ptr.hbm [resolvable:$true] %s141_s7 }
  0x12   : > { %p1039_p8 = pnand %p640_p5, %p130_p7  ;;  %s143_s10 = sshll.u32 %s953_s9, 4  ;;  %s144_s10 = int_to_ptr.vmem [resolvable:$true] %s143_s10 }
  0x13   : > { %s1049_s11 = sadd.s32 1, %s946_s26   ;;  %s954_s12 = smov 64  }
  0x14   : > { %p733_p9 = pneg %p1039_p8  ;;  %s955_s13 = smov 4  }
  0x15   : > { %s35_s14 = ssub.s32 %s946_s26, %s1049_s11  ;;  %s38_s15 = sadd.s32 1, %s942_s0 }
  0x16   : > { %p734_p10 = pnand %p733_p9, %p52_p1  ;;  %p36_p12 = scmp.eq.s32.totalorder %s35_s14, 0 }
  0x17   : > { %p45_p13 = scmp.ne.s32.totalorder %s942_s0, %s938_s25  ;;  %p46_p0 = scmp.eq.s32.totalorder %s946_s26, 0 }
  0x18   : > { %736 = dma.hbm_to_vmem [thread:$0]  (!%p734_p10), %s142_s7, 6144, %s144_s10, [#allocation9], %s954_s12, %s954_s12, %s955_s13  }
  0x19   : > { %p746_p3 = scmp.lt.s32.totalorder %s946_s26, 2  ;;  %p47_p5 = por %p46_p0, %p45_p13 }
  0x1a   : > { %s1059_s16 = scalar_select %p36_p12, %s942_s0, %s38_s15  }
  0x1b   : > { %p1063_p7 = por %p117_p2, %p45_p13  ;;  %s160_s18 = sand.u32 1, %s942_s0  }
  0x1c   : > { %s690_s19 = sshll.u32 %s946_s26, 8  ;;  %s643_s20 = sshll.u32 %s160_s18, 8 }
  0x1d   : > { %s169_s23 = scalar_lea.hbm %s1340_s2, %s690_s19  ;;  %s164_s30 = scalar_lea.vmem [#allocation5], %s643_s20 }
  0x1e   : > { %s170_s27 = sshll.u32 %s169_s23, 4  ;;  %s172_s6 = sshll.u32 %s164_s30, 4  ;;  %s171_s27 = int_to_ptr.hbm [resolvable:$true] %s170_s27  ;;  %s173_s6 = int_to_ptr.vmem [resolvable:$true] %s172_s6 }
  0x1f   : > { %p1074_p9 = pnand %p746_p3, %p47_p5  ;;  %s161_s9 = scalar_lea.sflag [#allocation6], %s160_s18 }
  0x20   : > { %s840_s10 = sshra.s32 %s171_s27, 4  ;;  %s847_s15 = scalar_lea.hbm %s1340_s2, 512  ;;  %s841_s10 = int_to_ptr.hbm [resolvable:$true] %s840_s10 }
  0x21   : > { %s842_s12 = scalar_lea.hbm %s841_s10, 256  ;;  %p844_p10 = pneg %p1074_p9 }
  0x22   : > { %p843_p2 = scmp.ne.s32.totalorder %s841_s10, %s842_s12  ;;  %p848_p0 = scmp.lt.s32.totalorder %s841_s10, %s1340_s2 }
  0x23   : > { %p849_p3 = scmp.lt.s32.totalorder %s847_s15, %s842_s12 }
  0x24   : > { %p845_p12 = pnand %p844_p10, %p843_p2 }
  0x25   : > { %p850_p5 = por %p849_p3, %p848_p0 }
  0x26   : > { %p846_p13 = pneg %p845_p12 }
  0x28   : > { %p851_p11 = pnand %p850_p5, %p846_p13 }
  0x2a   : > { %854 = shalt.err (!%p851_p11)
}
  0x2b   : > { %s956_s18 = smov 128   ;;  %s957_s21 = smov 8  }
  0x2c   : > { %740 = dma.hbm_to_vmem [thread:$0]  (!%p1074_p9), %s171_s27, 4096, %s173_s6, %s161_s9, %s956_s18, %s956_s18, %s957_s21  }
  0x2d   : > { %184 = sbr.rel (%p1039_p8) target bundleno = 335 (0x14f), region = 32  ;;  %s1091_s22 = sand.u32 (!%p1039_p8), 1, %s938_s25  }
  0x2e   : > { %s647_s23 = sshll.u32 (!%p1039_p8), %s1091_s22, 8  ;;  %s187_s30 = scalar_lea.sflag (!%p1039_p8), [#allocation6], %s1091_s22 }
  0x2f   : > { %s1095_s10 = scalar_lea.vmem (!%p1039_p8), [#allocation5], %s647_s23 }
  0x32   : > { %921 = dma.done.wait (%p1026_p4), %s187_s30, 4096  }
  0x33   : > { %923 = vsyncadd (%p1026_p4), %s187_s30, 4294963200 }
  0x34   : > { %925 = dma.done.wait (%p52_p1), [#allocation9], 6144  }
  0x35   : > { %927 = vsyncadd (%p52_p1), [#allocation9], 4294961152  ;;  %s1105_s8 = sld [smem:[#allocation4]]  ;;  %v221_v0 = vld [vmem:[%s1095_s10] sm:$0xff]  ;;  %v222_v1 = vld [vmem:[%s1095_s10 + $0x8] sm:$0xff]  ;;  %s1110_s28 = scalar_lea.vmem [#allocation10], %s647_s23 }
  0x36   : > { %v223_v2 = vld [vmem:[%s1095_s10 + $0x10] sm:$0xff]  ;;  %253 = vst [vmem:[%s1110_s28] sm:$0xff] %v221_v0  ;;  %v224_v3 = vld [vmem:[%s1095_s10 + $0x18] sm:$0xff]  ;;  %v225_v4 = vld [vmem:[%s1095_s10 + $0x20] sm:$0xff] }
  0x37   : > { %254 = vst [vmem:[%s1110_s28 + $0x8] sm:$0xff] %v222_v1  ;;  %v226_v5 = vld [vmem:[%s1095_s10 + $0x28] sm:$0xff]  ;;  %v227_v6 = vld [vmem:[%s1095_s10 + $0x30] sm:$0xff]  ;;  %v228_v7 = vld [vmem:[%s1095_s10 + $0x38] sm:$0xff] }
  0x38   : > { %255 = vst [vmem:[%s1110_s28 + $0x10] sm:$0xff] %v223_v2  ;;  %v229_v8 = vld [vmem:[%s1095_s10 + $0x40] sm:$0xff]  ;;  %v230_v9 = vld [vmem:[%s1095_s10 + $0x48] sm:$0xff]  ;;  %v231_v10 = vld [vmem:[%s1095_s10 + $0x50] sm:$0xff] }
  0x39   : > { %256 = vst [vmem:[%s1110_s28 + $0x18] sm:$0xff] %v224_v3  ;;  %v232_v11 = vld [vmem:[%s1095_s10 + $0x58] sm:$0xff]  ;;  %v233_v12 = vld [vmem:[%s1095_s10 + $0x60] sm:$0xff]  ;;  %v234_v13 = vld [vmem:[%s1095_s10 + $0x68] sm:$0xff] }
  0x3a   : > { %257 = vst [vmem:[%s1110_s28 + $0x20] sm:$0xff] %v225_v4  ;;  %v235_v14 = vld [vmem:[%s1095_s10 + $0x70] sm:$0xff]  ;;  %v236_v15 = vld [vmem:[%s1095_s10 + $0x78] sm:$0xff]  ;;  %v237_v16 = vld [vmem:[%s1095_s10 + $0x80] sm:$0xff] }
  0x3b   : > { %258 = vst [vmem:[%s1110_s28 + $0x28] sm:$0xff] %v226_v5  ;;  %v238_v17 = vld [vmem:[%s1095_s10 + $0x88] sm:$0xff]  ;;  %v239_v18 = vld [vmem:[%s1095_s10 + $0x90] sm:$0xff]  ;;  %v240_v19 = vld [vmem:[%s1095_s10 + $0x98] sm:$0xff]  ;;  %p650_p1 = scmp.le.s32.totalorder %s1105_s8, 0 }
  0x3c   : > { %259 = vst [vmem:[%s1110_s28 + $0x30] sm:$0xff] %v227_v6  ;;  %v241_v20 = vld [vmem:[%s1095_s10 + $0xa0] sm:$0xff]  ;;  %v242_v21 = vld [vmem:[%s1095_s10 + $0xa8] sm:$0xff]  ;;  %v243_v22 = vld [vmem:[%s1095_s10 + $0xb0] sm:$0xff]  ;;  %s1174_s27 = smov (!%p650_p1), 0  }
  0x3d   : > { %260 = vst [vmem:[%s1110_s28 + $0x38] sm:$0xff] %v228_v7  ;;  %v244_v23 = vld [vmem:[%s1095_s10 + $0xb8] sm:$0xff]  ;;  %v245_v24 = vld [vmem:[%s1095_s10 + $0xc0] sm:$0xff]  ;;  %v246_v25 = vld [vmem:[%s1095_s10 + $0xc8] sm:$0xff] }
  0x3e   : > { %261 = vst [vmem:[%s1110_s28 + $0x40] sm:$0xff] %v229_v8  ;;  %v247_v26 = vld [vmem:[%s1095_s10 + $0xd0] sm:$0xff]  ;;  %v248_v27 = vld [vmem:[%s1095_s10 + $0xd8] sm:$0xff]  ;;  %v249_v28 = vld [vmem:[%s1095_s10 + $0xe0] sm:$0xff] }
  0x3f   : > { %262 = vst [vmem:[%s1110_s28 + $0x48] sm:$0xff] %v230_v9  ;;  %v250_v29 = vld [vmem:[%s1095_s10 + $0xe8] sm:$0xff]  ;;  %v251_v30 = vld [vmem:[%s1095_s10 + $0xf0] sm:$0xff]  ;;  %v252_v31 = vld [vmem:[%s1095_s10 + $0xf8] sm:$0xff] }
  0x40   : > { %263 = vst [vmem:[%s1110_s28 + $0x50] sm:$0xff] %v231_v10 }
  0x41   : > { %264 = vst [vmem:[%s1110_s28 + $0x58] sm:$0xff] %v232_v11 }
  0x42   : > { %265 = vst [vmem:[%s1110_s28 + $0x60] sm:$0xff] %v233_v12 }
  0x43   : > { %266 = vst [vmem:[%s1110_s28 + $0x68] sm:$0xff] %v234_v13 }
  0x44   : > { %267 = vst [vmem:[%s1110_s28 + $0x70] sm:$0xff] %v235_v14 }
  0x45   : > { %268 = vst [vmem:[%s1110_s28 + $0x78] sm:$0xff] %v236_v15 }
  0x46   : > { %269 = vst [vmem:[%s1110_s28 + $0x80] sm:$0xff] %v237_v16 }
  0x47   : > { %270 = vst [vmem:[%s1110_s28 + $0x88] sm:$0xff] %v238_v17 }
  0x48   : > { %271 = vst [vmem:[%s1110_s28 + $0x90] sm:$0xff] %v239_v18 }
  0x49   : > { %272 = vst [vmem:[%s1110_s28 + $0x98] sm:$0xff] %v240_v19 }
  0x4a   : > { %273 = vst [vmem:[%s1110_s28 + $0xa0] sm:$0xff] %v241_v20 }
  0x4b   : > { %274 = vst [vmem:[%s1110_s28 + $0xa8] sm:$0xff] %v242_v21 }
  0x4c   : > { %275 = vst [vmem:[%s1110_s28 + $0xb0] sm:$0xff] %v243_v22 }
  0x4d   : > { %276 = vst [vmem:[%s1110_s28 + $0xb8] sm:$0xff] %v244_v23 }
  0x4e   : > { %277 = vst [vmem:[%s1110_s28 + $0xc0] sm:$0xff] %v245_v24 }
  0x4f   : > { %278 = vst [vmem:[%s1110_s28 + $0xc8] sm:$0xff] %v246_v25 }
  0x50   : > { %279 = vst [vmem:[%s1110_s28 + $0xd0] sm:$0xff] %v247_v26 }
  0x51   : > { %280 = vst [vmem:[%s1110_s28 + $0xd8] sm:$0xff] %v248_v27  ;;  %603 = sbr.rel (%p650_p1) target bundleno = 319 (0x13f), region = 84 }
  0x52   : > { %281 = vst [vmem:[%s1110_s28 + $0xe0] sm:$0xff] %v249_v28 }
  0x53   : > { %282 = vst [vmem:[%s1110_s28 + $0xe8] sm:$0xff] %v250_v29 }
  0x54   : > { %283 = vst [vmem:[%s1110_s28 + $0xf0] sm:$0xff] %v251_v30 }
  0x55   : > { %284 = vst [vmem:[%s1110_s28 + $0xf8] sm:$0xff] %v252_v31 }
  0x56 LB: >> { %s1180_s6 = sld [smem:[#allocation3 + %s950_s27]]  ;;  %v293_v40 = vld [vmem:[%s1110_s28] sm:$0xff]  ;;  %v294_v41 = vld [vmem:[%s1110_s28 + $0x8] sm:$0xff]  ;;  %v295_v52 = vld [vmem:[%s1110_s28 + $0x10] sm:$0xff]  ;;  %s289_s27 = sadd.s32 1, %s950_s27   ;;  %s950_s27 = sphi %s1174_s27, %s289_s27  }
  0x57   : >> { %v301_v42 = vld [vmem:[%s1110_s28 + $0x40] sm:$0xff]  ;;  %v302_v43 = vld [vmem:[%s1110_s28 + $0x48] sm:$0xff]  ;;  %v325_v48 = vpack.c.bf16 %v294_v41, %v293_v40  ;;  %v296_v53 = vld [vmem:[%s1110_s28 + $0x18] sm:$0xff]  ;;  %p288_p4 = scmp.ge.s32.totalorder %s289_s27, %s1105_s8 }
  0x58   : >> { %v309_v44 = vld [vmem:[%s1110_s28 + $0x80] sm:$0xff]  ;;  %v310_v45 = vld [vmem:[%s1110_s28 + $0x88] sm:$0xff]  ;;  %v329_v49 = vpack.c.bf16 %v302_v43, %v301_v42  ;;  %v303_v54 = vld [vmem:[%s1110_s28 + $0x50] sm:$0xff]  ;;  %v326_v60 = vpack.c.bf16 %v296_v53, %v295_v52 }
  0x59   : >> { %v317_v46 = vld [vmem:[%s1110_s28 + $0xc0] sm:$0xff]  ;;  %v318_v47 = vld [vmem:[%s1110_s28 + $0xc8] sm:$0xff]  ;;  %v333_v50 = vpack.c.bf16 %v310_v45, %v309_v44  ;;  %v304_v55 = vld [vmem:[%s1110_s28 + $0x58] sm:$0xff] }
  0x5a   : >> { %v337_v51 = vpack.c.bf16 %v318_v47, %v317_v46  ;;  %v311_v56 = vld [vmem:[%s1110_s28 + $0x90] sm:$0xff]  ;;  %v312_v57 = vld [vmem:[%s1110_s28 + $0x98] sm:$0xff]  ;;  %v330_v61 = vpack.c.bf16 %v304_v55, %v303_v54  ;;  %v297_v0 = vld [vmem:[%s1110_s28 + $0x20] sm:$0xff] }
  0x5b   : >> { %v319_v58 = vld [vmem:[%s1110_s28 + $0xd0] sm:$0xff]  ;;  %v320_v59 = vld [vmem:[%s1110_s28 + $0xd8] sm:$0xff]  ;;  %v334_v62 = vpack.c.bf16 %v312_v57, %v311_v56  ;;  %v298_v1 = vld [vmem:[%s1110_s28 + $0x28] sm:$0xff] }
  0x5c   : >> { %s691_s7 = sshll.u32 %s1180_s6, 6  ;;  %s360_s13 = scalar_lea.vmem %s1342_s4, %s1180_s6  ;;  %v338_v63 = vpack.c.bf16 %v320_v59, %v319_v58  ;;  %v305_v2 = vld [vmem:[%s1110_s28 + $0x60] sm:$0xff]  ;;  %v306_v3 = vld [vmem:[%s1110_s28 + $0x68] sm:$0xff]  ;;  %v327_v8 = vpack.c.bf16 %v298_v1, %v297_v0  ;;  %v299_v12 = vld [vmem:[%s1110_s28 + $0x30] sm:$0xff] }
  0x5d   : >> { %s1187_s14 = scalar_lea.vmem [#allocation8], %s691_s7  ;;  %v313_v4 = vld [vmem:[%s1110_s28 + $0xa0] sm:$0xff]  ;;  %v314_v5 = vld [vmem:[%s1110_s28 + $0xa8] sm:$0xff]  ;;  %v331_v9 = vpack.c.bf16 %v306_v3, %v305_v2  ;;  %v300_v13 = vld [vmem:[%s1110_s28 + $0x38] sm:$0xff] }
  0x5e   : >> { %v699_v32 = vld [vmem:[%s1187_s14 + $0x38] sm:$0xff]  ;;  %v698_v33 = vld [vmem:[%s1187_s14 + $0x30] sm:$0xff]  ;;  %v697_v34 = vld [vmem:[%s1187_s14 + $0x28] sm:$0xff]  ;;  %v335_v10 = vpack.c.bf16 %v314_v5, %v313_v4  ;;  %v328_v20 = vpack.c.bf16 %v300_v13, %v299_v12 }
  0x5f   : >> { %411 = vmatpush.bf16.msra.mxu0 %v699_v32  ;;  %701 = vmatpush.bf16.msra.mxu1 %v699_v32  ;;  %v696_v35 = vld [vmem:[%s1187_s14 + $0x20] sm:$0xff]  ;;  %v695_v36 = vld [vmem:[%s1187_s14 + $0x18] sm:$0xff]  ;;  %v694_v37 = vld [vmem:[%s1187_s14 + $0x10] sm:$0xff] }
  0x60   : >> { %702 = vmatpush.bf16.msra.mxu2 %v699_v32  ;;  %703 = vmatpush.bf16.msra.mxu3 %v699_v32  ;;  %v693_v38 = vld [vmem:[%s1187_s14 + $0x8] sm:$0xff]  ;;  %v692_v39 = vld [vmem:[%s1187_s14] sm:$0xff]  ;;  %v307_v14 = vld [vmem:[%s1110_s28 + $0x70] sm:$0xff] }
  0x61   : >> { %v321_v6 = vld [vmem:[%s1110_s28 + $0xe0] sm:$0xff]  ;;  %v322_v7 = vld [vmem:[%s1110_s28 + $0xe8] sm:$0xff]  ;;  %v308_v15 = vld [vmem:[%s1110_s28 + $0x78] sm:$0xff] }
  0x62   : >> { %v339_v11 = vpack.c.bf16 %v322_v7, %v321_v6  ;;  %v315_v16 = vld [vmem:[%s1110_s28 + $0xb0] sm:$0xff]  ;;  %v316_v17 = vld [vmem:[%s1110_s28 + $0xb8] sm:$0xff]  ;;  %v332_v21 = vpack.c.bf16 %v308_v15, %v307_v14  ;;  %v1234_v24 = vld [vmem:[%s360_s13] ss:$0 sm:$0xff] }
  0x63   : >> { %412 = vmatpush.bf16.msra.mxu0 %v698_v33  ;;  %704 = vmatpush.bf16.msra.mxu1 %v698_v33  ;;  %v323_v18 = vld [vmem:[%s1110_s28 + $0xf0] sm:$0xff]  ;;  %v324_v19 = vld [vmem:[%s1110_s28 + $0xf8] sm:$0xff]  ;;  %v336_v22 = vpack.c.bf16 %v316_v17, %v315_v16 }
  0x64   : >> { %705 = vmatpush.bf16.msra.mxu2 %v698_v33  ;;  %706 = vmatpush.bf16.msra.mxu3 %v698_v33  ;;  %v340_v23 = vpack.c.bf16 %v324_v19, %v323_v18 }
  0x67   : >> { %413 = vmatpush.bf16.msra.mxu0 %v697_v34  ;;  %707 = vmatpush.bf16.msra.mxu1 %v697_v34 }
  0x68   : >> { %708 = vmatpush.bf16.msra.mxu2 %v697_v34  ;;  %709 = vmatpush.bf16.msra.mxu3 %v697_v34 }
  0x6b   : >> { %414 = vmatpush.bf16.msra.mxu0 %v696_v35  ;;  %710 = vmatpush.bf16.msra.mxu1 %v696_v35 }
  0x6c   : >> { %711 = vmatpush.bf16.msra.mxu2 %v696_v35  ;;  %712 = vmatpush.bf16.msra.mxu3 %v696_v35 }
  0x6f   : >> { %415 = vmatpush.bf16.msra.mxu0 %v695_v36  ;;  %713 = vmatpush.bf16.msra.mxu1 %v695_v36 }
  0x70   : >> { %714 = vmatpush.bf16.msra.mxu2 %v695_v36  ;;  %715 = vmatpush.bf16.msra.mxu3 %v695_v36 }
  0x73   : >> { %416 = vmatpush.bf16.msra.mxu0 %v694_v37  ;;  %716 = vmatpush.bf16.msra.mxu1 %v694_v37 }
  0x74   : >> { %717 = vmatpush.bf16.msra.mxu2 %v694_v37  ;;  %718 = vmatpush.bf16.msra.mxu3 %v694_v37 }
  0x77   : >> { %417 = vmatpush.bf16.msra.mxu0 %v693_v38  ;;  %719 = vmatpush.bf16.msra.mxu1 %v693_v38 }
  0x78   : >> { %720 = vmatpush.bf16.msra.mxu2 %v693_v38  ;;  %721 = vmatpush.bf16.msra.mxu3 %v693_v38 }
  0x7b   : >> { %418 = vmatpush.bf16.msra.mxu0 %v692_v39  ;;  %722 = vmatpush.bf16.msra.mxu1 %v692_v39 }
  0x7c   : >> { %723 = vmatpush.bf16.msra.mxu2 %v692_v39  ;;  %724 = vmatpush.bf16.msra.mxu3 %v692_v39 }
  0x7e   : >> { %419 = vmatmul.bf16.vlgmr.msra.gmra.mxu0 %v325_v48  ;;  %439 = vmatmul.bf16.vlgmr.msra.gmra.mxu1 %v329_v49 }
  0x7f   : >> { %459 = vmatmul.bf16.vlgmr.msra.gmra.mxu2 %v333_v50  ;;  %479 = vmatmul.bf16.vlgmr.msra.gmra.mxu3 %v337_v51 }
  0x8e   : >> { %424 = vmatmul.bf16.gmra.mxu0 %v326_v60  ;;  %444 = vmatmul.bf16.gmra.mxu1 %v330_v61 }
  0x8f   : >> { %464 = vmatmul.bf16.gmra.mxu2 %v334_v62  ;;  %484 = vmatmul.bf16.gmra.mxu3 %v338_v63 }
  0x9e   : >> { %429 = vmatmul.bf16.gmra.mxu0 %v327_v8  ;;  %449 = vmatmul.bf16.gmra.mxu1 %v331_v9 }
  0x9f   : >> { %469 = vmatmul.bf16.gmra.mxu2 %v335_v10  ;;  %489 = vmatmul.bf16.gmra.mxu3 %v339_v11 }
  0xae   : >> { %434 = vmatmul.bf16.gmra.mxu0 %v328_v20  ;;  %454 = vmatmul.bf16.gmra.mxu1 %v332_v21 }
  0xaf   : >> { %474 = vmatmul.bf16.gmra.mxu2 %v336_v22  ;;  %494 = vmatmul.bf16.gmra.mxu3 %v340_v23 }
  0xfb   : >> { %v420_v25 = vpop.f32.mrf.mxu0  ;;  %v440_v26 = vpop.f32.mrf.mxu1 }
  0xfc   : >> { %v421_v27 = vadd.f32 %v1234_v24, %v420_v25  ;;  %v441_v28 = vadd.f32 %v1234_v24, %v440_v26 }
  0xfe   : >> { %500 = vst [vmem:[%s1110_s28] sm:$0xff] %v421_v27 }
  0xff   : >> { %508 = vst [vmem:[%s1110_s28 + $0x40] sm:$0xff] %v441_v28 }
 0x102   : >> { %v460_v29 = vpop.f32.mrf.mxu2  ;;  %v480_v30 = vpop.f32.mrf.mxu3 }
 0x103   : >> { %v461_v31 = vadd.f32 %v1234_v24, %v460_v29  ;;  %v481_v32 = vadd.f32 %v1234_v24, %v480_v30  ;;  %v422_v33 = vpop.f32.mrf.mxu0  ;;  %v442_v34 = vpop.f32.mrf.mxu1 }
 0x104   : >> { %v423_v35 = vadd.f32 %v1234_v24, %v422_v33  ;;  %v443_v36 = vadd.f32 %v1234_v24, %v442_v34 }
 0x105   : >> { %516 = vst [vmem:[%s1110_s28 + $0x80] sm:$0xff] %v461_v31 }
 0x106   : >> { %524 = vst [vmem:[%s1110_s28 + $0xc0] sm:$0xff] %v481_v32 }
 0x107   : >> { %501 = vst [vmem:[%s1110_s28 + $0x8] sm:$0xff] %v423_v35 }
 0x108   : >> { %509 = vst [vmem:[%s1110_s28 + $0x48] sm:$0xff] %v443_v36 }
 0x10a   : >> { %v462_v37 = vpop.f32.mrf.mxu2  ;;  %v482_v38 = vpop.f32.mrf.mxu3 }
 0x10b   : >> { %v463_v39 = vadd.f32 %v1234_v24, %v462_v37  ;;  %v483_v40 = vadd.f32 %v1234_v24, %v482_v38  ;;  %v425_v41 = vpop.f32.mrf.mxu0  ;;  %v445_v42 = vpop.f32.mrf.mxu1 }
 0x10c   : >> { %v426_v43 = vadd.f32 %v1234_v24, %v425_v41  ;;  %v446_v44 = vadd.f32 %v1234_v24, %v445_v42 }
 0x10d   : >> { %517 = vst [vmem:[%s1110_s28 + $0x88] sm:$0xff] %v463_v39 }
 0x10e   : >> { %525 = vst [vmem:[%s1110_s28 + $0xc8] sm:$0xff] %v483_v40 }
 0x10f   : >> { %502 = vst [vmem:[%s1110_s28 + $0x10] sm:$0xff] %v426_v43 }
 0x110   : >> { %510 = vst [vmem:[%s1110_s28 + $0x50] sm:$0xff] %v446_v44 }
 0x112   : >> { %v465_v45 = vpop.f32.mrf.mxu2  ;;  %v485_v46 = vpop.f32.mrf.mxu3 }
 0x113   : >> { %v466_v47 = vadd.f32 %v1234_v24, %v465_v45  ;;  %v486_v48 = vadd.f32 %v1234_v24, %v485_v46  ;;  %v427_v49 = vpop.f32.mrf.mxu0  ;;  %v447_v50 = vpop.f32.mrf.mxu1 }
 0x114   : >> { %v428_v51 = vadd.f32 %v1234_v24, %v427_v49  ;;  %v448_v52 = vadd.f32 %v1234_v24, %v447_v50 }
 0x115   : >> { %518 = vst [vmem:[%s1110_s28 + $0x90] sm:$0xff] %v466_v47 }
 0x116   : >> { %526 = vst [vmem:[%s1110_s28 + $0xd0] sm:$0xff] %v486_v48 }
 0x117   : >> { %503 = vst [vmem:[%s1110_s28 + $0x18] sm:$0xff] %v428_v51 }
 0x118   : >> { %511 = vst [vmem:[%s1110_s28 + $0x58] sm:$0xff] %v448_v52 }
 0x11a   : >> { %v467_v53 = vpop.f32.mrf.mxu2  ;;  %v487_v54 = vpop.f32.mrf.mxu3 }
 0x11b   : >> { %v468_v55 = vadd.f32 %v1234_v24, %v467_v53  ;;  %v488_v56 = vadd.f32 %v1234_v24, %v487_v54  ;;  %v430_v57 = vpop.f32.mrf.mxu0  ;;  %v450_v58 = vpop.f32.mrf.mxu1 }
 0x11c   : >> { %v431_v59 = vadd.f32 %v1234_v24, %v430_v57  ;;  %v451_v60 = vadd.f32 %v1234_v24, %v450_v58 }
 0x11d   : >> { %519 = vst [vmem:[%s1110_s28 + $0x98] sm:$0xff] %v468_v55 }
 0x11e   : >> { %527 = vst [vmem:[%s1110_s28 + $0xd8] sm:$0xff] %v488_v56 }
 0x11f   : >> { %504 = vst [vmem:[%s1110_s28 + $0x20] sm:$0xff] %v431_v59 }
 0x120   : >> { %512 = vst [vmem:[%s1110_s28 + $0x60] sm:$0xff] %v451_v60 }
 0x122   : >> { %v470_v61 = vpop.f32.mrf.mxu2  ;;  %v490_v62 = vpop.f32.mrf.mxu3 }
 0x123   : >> { %v471_v63 = vadd.f32 %v1234_v24, %v470_v61  ;;  %v491_v0 = vadd.f32 %v1234_v24, %v490_v62  ;;  %v432_v1 = vpop.f32.mrf.mxu0  ;;  %v452_v2 = vpop.f32.mrf.mxu1 }
 0x124   : >> { %v433_v3 = vadd.f32 %v1234_v24, %v432_v1  ;;  %v453_v4 = vadd.f32 %v1234_v24, %v452_v2 }
 0x125   : >> { %520 = vst [vmem:[%s1110_s28 + $0xa0] sm:$0xff] %v471_v63 }
 0x126   : >> { %528 = vst [vmem:[%s1110_s28 + $0xe0] sm:$0xff] %v491_v0 }
 0x127   : >> { %505 = vst [vmem:[%s1110_s28 + $0x28] sm:$0xff] %v433_v3 }
 0x128   : >> { %513 = vst [vmem:[%s1110_s28 + $0x68] sm:$0xff] %v453_v4 }
 0x12a   : >> { %v472_v5 = vpop.f32.mrf.mxu2  ;;  %v492_v6 = vpop.f32.mrf.mxu3 }
 0x12b   : >> { %v473_v7 = vadd.f32 %v1234_v24, %v472_v5  ;;  %v493_v8 = vadd.f32 %v1234_v24, %v492_v6  ;;  %v435_v9 = vpop.f32.mrf.mxu0  ;;  %v455_v10 = vpop.f32.mrf.mxu1 }
 0x12c   : >> { %v436_v11 = vadd.f32 %v1234_v24, %v435_v9  ;;  %v456_v12 = vadd.f32 %v1234_v24, %v455_v10 }
 0x12d   : >> { %521 = vst [vmem:[%s1110_s28 + $0xa8] sm:$0xff] %v473_v7 }
 0x12e   : >> { %529 = vst [vmem:[%s1110_s28 + $0xe8] sm:$0xff] %v493_v8 }
 0x12f   : >> { %506 = vst [vmem:[%s1110_s28 + $0x30] sm:$0xff] %v436_v11 }
 0x130   : >> { %514 = vst [vmem:[%s1110_s28 + $0x70] sm:$0xff] %v456_v12 }
 0x132   : >> { %v475_v13 = vpop.f32.mrf.mxu2  ;;  %v495_v14 = vpop.f32.mrf.mxu3 }
 0x133   : >> { %v476_v15 = vadd.f32 %v1234_v24, %v475_v13  ;;  %v496_v16 = vadd.f32 %v1234_v24, %v495_v14  ;;  %v437_v17 = vpop.f32.mrf.mxu0  ;;  %v457_v18 = vpop.f32.mrf.mxu1 }
 0x134   : >> { %v438_v19 = vadd.f32 %v1234_v24, %v437_v17  ;;  %v458_v20 = vadd.f32 %v1234_v24, %v457_v18 }
 0x135   : >> { %522 = vst [vmem:[%s1110_s28 + $0xb0] sm:$0xff] %v476_v15 }
 0x136   : >> { %530 = vst [vmem:[%s1110_s28 + $0xf0] sm:$0xff] %v496_v16 }
 0x137   : >> { %507 = vst [vmem:[%s1110_s28 + $0x38] sm:$0xff] %v438_v19 }
 0x138   : >> { %515 = vst [vmem:[%s1110_s28 + $0x78] sm:$0xff] %v458_v20 }
 0x13a   : >> { %v477_v21 = vpop.f32.mrf.mxu2  ;;  %v497_v22 = vpop.f32.mrf.mxu3  ;;  %291 = sbr.rel (!%p288_p4) target bundleno = 86 (0x56), region = 90 }
 0x13b   : >> { %v478_v23 = vadd.f32 %v1234_v24, %v477_v21  ;;  %v498_v25 = vadd.f32 %v1234_v24, %v497_v22 }
 0x13d   : >> { %523 = vst [vmem:[%s1110_s28 + $0xb8] sm:$0xff] %v478_v23 }
 0x13e   : >> { %531 = vst [vmem:[%s1110_s28 + $0xf8] sm:$0xff] %v498_v25 }
 0x13f PF: > { %s700_s20 = sshll.u32 %s1017_s1, 8  ;;  %s545_s30 = sshll.u32 %s1110_s28, 4  ;;  %s546_s30 = int_to_ptr.vmem [resolvable:$true] %s545_s30 }
 0x140   : > { %s544_s23 = scalar_lea.hbm %s1343_s5, %s700_s20  ;;  %s533_s6 = scalar_lea.sflag [#allocation7], %s1091_s22 }
 0x141   : > { %s547_s10 = sshll.u32 %s544_s23, 4  ;;  %s890_s1 = scalar_lea.hbm %s1343_s5, 512  ;;  %s548_s10 = int_to_ptr.hbm [resolvable:$true] %s547_s10 }
 0x142   : > { %s884_s7 = sshra.s32 %s548_s10, 4  ;;  %s885_s7 = int_to_ptr.hbm [resolvable:$true] %s884_s7 }
 0x143   : > { %s886_s9 = scalar_lea.hbm %s885_s7, 256  ;;  %p891_p2 = scmp.lt.s32.totalorder %s885_s7, %s1343_s5 }
 0x144   : > { %p887_p8 = scmp.ne.s32.totalorder %s885_s7, %s886_s9  ;;  %p892_p10 = scmp.lt.s32.totalorder %s890_s1, %s886_s9 }
 0x146   : > { %p888_p11 = pnand %p887_p8, %p1063_p7  ;;  %p893_p12 = por %p892_p10, %p891_p2 }
 0x148   : > { %p889_p9 = pneg %p888_p11 }
 0x14a   : > { %p894_p13 = pnand %p893_p12, %p889_p9 }
 0x14c   : > { %897 = shalt.err (!%p894_p13)
}
 0x14d   : > { %s958_s22 = smov 128   ;;  %s959_s28 = smov 8  }
 0x14e   : > { %731 = dma.vmem_to_hbm [thread:$0]  (%p1063_p7), %s546_s30, 4096, %s548_s10, %s533_s6, %s958_s22, %s958_s22, %s959_s28  }
 0x14f PF: > { %s562_s14 = sand.u32 1, %s934_s24   ;;  %p1349_p0 = scmp.ge.s32.totalorder %s946_s26, 2 }
 0x150   : > { %s563_s15 = scalar_lea.sflag [#allocation7], %s562_s14 }
 0x151   : > { %p742_p3 = pnand %p1349_p0, %p1031_p6 }
 0x153   : > { %p743_p5 = pneg %p742_p3 }
 0x155   : > { %929 = dma.done.wait (%p743_p5), %s563_s15, 4096  }
 0x156   : > { %931 = vsyncadd (%p743_p5), %s563_s15, 4294963200  ;;  %p28_p1 = scmp.ge.s32.totalorder %s1049_s11, 4   ;;  %s1350_s24 = smov %s938_s25 }
 0x157   : > { %s1351_s25 = smov %s942_s0  ;;  %s1352_s0 = smov %s1059_s16 }
 0x158   : > { %s1353_s26 = smov %s1049_s11  ;;  %30 = sbr.rel (!%p28_p1) target bundleno = 12 (0xc), region = 101 }
 0x15d   :  { %569 = vsyncpa [#allocation6], 1 }
 0x15e   :  { %571 = vsyncpa [#allocation6 + $0x1], 1 }
 0x15f   :  { %572 = vsyncpa [#allocation9], 1 }
 0x160   :  { %573 = vsyncpa [#allocation7], 1 }
 0x161   :  { %575 = vsyncpa [#allocation7 + $0x1], 1 }

</bundles_post_ra>
